<compile_context>
chip_gen: v7x
topology: tpu7x:2x2x1
jax: 0.10.0
libtpu: 0.0.40
codegen_flags: <defaults>
</compile_context>

<pallas_src>
import math

import jax
import jax.numpy as jnp
from jax import lax
from jax.experimental import pallas as pl
from jax.experimental.pallas import tpu as pltpu

_NEG_INF = -1e30  # finite "minus infinity" (avoids inf-inf style corner cases)


# ----------------------------- helpers ---------------------------------------

def _pick_tile(n, preferred):
    """Largest multiple-of-8 divisor of n that is <= preferred, else n (full dim)."""
    best = None
    for t in range(8, min(n, preferred) + 1, 8):
        if n % t == 0:
            best = t
    return best if best is not None else n


def _vmem_budget(tile_bytes):
    """Scoped-VMEM limit sized to the actual tiles (with headroom), <= 64 MiB."""
    return int(min(max(2 * tile_bytes + (4 << 20), 32 << 20), 64 << 20))


# ----------------------------- kernel 1: fused QKV projection ----------------

def _qkv_proj_kernel(x_ref, w_ref, b_ref, qkv_ref):
    """One row tile of the flattened (B*S, D) input per grid step.

    x_ref   : (tm, D)    bf16 row tile
    w_ref   : (3D, D)    bf16 packed [Wq*scale; Wk; Wv] in nn.Linear (Dout, Din)
                         layout, whole array resident in VMEM (single-buffered)
    b_ref   : (1, 3D)    f32 packed [bq*scale, bk, bv]
    qkv_ref : (tm, 3D)   bf16 output tile (lane-dense: full 3D written at once)
    """
    acc = lax.dot_general(
        x_ref[...], w_ref[...],
        dimension_numbers=(((1,), (1,)), ((), ())),   # contract D of both, no transpose
        preferred_element_type=jnp.float32,
    )
    qkv_ref[...] = (acc + b_ref[...]).astype(qkv_ref.dtype)


# ----------------------------- kernel 2: flash attention ---------------------

def _flash_attn_kernel(q_ref, k_ref, v_ref, o_ref, m_ref, l_ref, acc_ref):
    """Grid = (B, H, S//tq, S//tk); KV axis is last ("arbitrary" reduction axis).

    q_ref : (1, 1, tq, dh) bf16 (scale already folded into Wq)
    k_ref : (1, 1, tk, dh) bf16
    v_ref : (1, 1, tk, dh) bf16
    o_ref : (1, 1, tq, dh) f32
    m_ref, l_ref : (tq, 1) f32 VMEM scratch (running max / denom)
    acc_ref      : (tq, dh) f32 VMEM scratch (unnormalized context)
    """
    ki = pl.program_id(3)

    @pl.when(ki == 0)
    def _init():
        m_ref[...] = jnp.full(m_ref.shape, _NEG_INF, jnp.float32)
        l_ref[...] = jnp.zeros(l_ref.shape, jnp.float32)
        acc_ref[...] = jnp.zeros(acc_ref.shape, jnp.float32)

    q = q_ref[0, 0]          # (tq, dh)
    k = k_ref[0, 0]          # (tk, dh)
    v = v_ref[0, 0]          # (tk, dh)

    # scores = q @ k^T without an explicit transpose (contract dh of both); f32 acc.
    s = lax.dot_general(
        q, k,
        dimension_numbers=(((1,), (1,)), ((), ())),
        preferred_element_type=jnp.float32,
    )                                                     # (tq, tk) f32

    # Online (flash) softmax update, all in f32.
    m_prev = m_ref[...]                                   # (tq, 1)
    m_new = jnp.maximum(m_prev, jnp.max(s, axis=-1, keepdims=True))
    alpha = jnp.exp(m_prev - m_new)                       # (tq, 1)
    p = jnp.exp(s - m_new)                                # (tq, tk) f32

    l_ref[...] = alpha * l_ref[...] + jnp.sum(p, axis=-1, keepdims=True)
    acc_ref[...] = alpha * acc_ref[...] + jnp.dot(
        p.astype(v.dtype), v, preferred_element_type=jnp.float32)
    m_ref[...] = m_new

    @pl.when(ki == pl.num_programs(3) - 1)
    def _finalize():
        inv_l = pl.reciprocal(l_ref[...], approx=False)
        o_ref[0, 0] = (acc_ref[...] * inv_l).astype(o_ref.dtype)


# ----------------------------- wrapper ----------------------------------------

def self_attention_forward(hidden_states, params, n_heads, *,
                           compute_dtype=jnp.bfloat16,
                           q_block=256, kv_block=512, proj_block=256):
    """Pallas implementation of SelfAttention.forward (mask / head_mask = None)."""
    B, S, D = hidden_states.shape
    if D % n_heads != 0:
        raise ValueError(f"hidden dim {D} not divisible by n_heads {n_heads}")
    dh = D // n_heads
    scale = 1.0 / math.sqrt(dh)
    itemsize = jnp.dtype(compute_dtype).itemsize

    # ---- one-time host-side weight packing (scale folded into Wq / bq) ------
    w_qkv = jnp.concatenate(
        [params["wq"] * scale, params["wk"], params["wv"]], axis=0
    ).astype(compute_dtype)                                     # (3D, D)
    b_qkv = jnp.concatenate(
        [params["bq"] * scale, params["bk"], params["bv"]], axis=0
    ).astype(jnp.float32).reshape(1, 3 * D)                     # (1, 3D)

    x2 = hidden_states.reshape(B * S, D).astype(compute_dtype)  # free reshape

    # ---- kernel 1: fused QKV projection over row tiles ----------------------
    tm = _pick_tile(B * S, proj_block)
    proj_tiles = (
        2 * tm * D * itemsize          # x tiles (double-buffered)
        + 2 * tm * 3 * D * itemsize    # qkv output tiles (double-buffered)
        + 3 * D * D * itemsize         # packed weights (single buffer in VMEM)
        + 3 * D * 4                    # bias
    )
    qkv = pl.pallas_call(
        _qkv_proj_kernel,
        out_shape=jax.ShapeDtypeStruct((B * S, 3 * D), compute_dtype),
        grid=((B * S) // tm,),
        in_specs=[
            pl.BlockSpec((tm, D), lambda i: (i, 0)),
            # Grid-invariant packed weights/bias: whole array in VMEM, single copy
            # (no per-step double buffer) — the v7x VMEM-budget fix.
            pl.BlockSpec(memory_space=pltpu.MemorySpace.VMEM),
            pl.BlockSpec(memory_space=pltpu.MemorySpace.VMEM),
        ],
        out_specs=pl.BlockSpec((tm, 3 * D), lambda i: (i, 0)),
        compiler_params=pltpu.CompilerParams(
            dimension_semantics=("parallel",),
            vmem_limit_bytes=_vmem_budget(proj_tiles),
        ),
    )(x2, w_qkv, b_qkv)

    # ---- head split as XLA transposes (outside the kernels) -----------------
    # Keeps every Pallas tile (8,128)-aligned instead of slicing dh-wide lanes
    # inside the kernel.
    qkv = qkv.reshape(B, S, 3, n_heads, dh)
    q = jnp.transpose(qkv[:, :, 0], (0, 2, 1, 3))   # (B, H, S, dh)
    k = jnp.transpose(qkv[:, :, 1], (0, 2, 1, 3))
    v = jnp.transpose(qkv[:, :, 2], (0, 2, 1, 3))

    # ---- kernel 2: flash attention over (B, H, q-tiles, kv-tiles) -----------
    tq = _pick_tile(S, q_block)
    tk = _pick_tile(S, kv_block)
    nq, nk = S // tq, S // tk

    attn_tiles = (
        2 * tq * dh * itemsize          # q tiles
        + 2 * 2 * tk * dh * itemsize    # k, v tiles
        + 2 * tq * dh * 4               # o tiles
        + tq * dh * 4 + 2 * tq * 4      # acc / m / l scratch
        + tq * tk * 4                   # score tile (registers/VMEM)
    )
    ctx = pl.pallas_call(
        _flash_attn_kernel,
        out_shape=jax.ShapeDtypeStruct((B, n_heads, S, dh), jnp.float32),
        grid=(B, n_heads, nq, nk),
        in_specs=[
            pl.BlockSpec((1, 1, tq, dh), lambda b, h, qi, ki: (b, h, qi, 0)),
            pl.BlockSpec((1, 1, tk, dh), lambda b, h, qi, ki: (b, h, ki, 0)),
            pl.BlockSpec((1, 1, tk, dh), lambda b, h, qi, ki: (b, h, ki, 0)),
        ],
        out_specs=pl.BlockSpec((1, 1, tq, dh), lambda b, h, qi, ki: (b, h, qi, 0)),
        scratch_shapes=[
            pltpu.VMEM((tq, 1), jnp.float32),    # running max  m
            pltpu.VMEM((tq, 1), jnp.float32),    # running sum  l
            pltpu.VMEM((tq, dh), jnp.float32),   # unnormalized context
        ],
        compiler_params=pltpu.CompilerParams(
            dimension_semantics=("parallel", "parallel", "parallel", "arbitrary"),
            vmem_limit_bytes=_vmem_budget(attn_tiles),
        ),
    )(q, k, v)

    # ---- head merge (single XLA transpose) back to (B, S, D) ----------------
    out = jnp.transpose(ctx, (0, 2, 1, 3)).reshape(B, S, D)
    return out.astype(hidden_states.dtype)


# ----------------------------- reference (pure JAX, f32) ----------------------

def _reference(hidden_states, params, n_heads):
    B, S, D = hidden_states.shape
    dh = D // n_heads
    x = hidden_states.astype(jnp.float32)
    q = x @ params["wq"].T + params["bq"]
    k = x @ params["wk"].T + params["bk"]
    v = x @ params["wv"].T + params["bv"]

    def split(t):
        return t.reshape(B, S, n_heads, dh).transpose(0, 2, 1, 3)

    qh, kh, vh = split(q), split(k), split(v)
    scores = jnp.einsum("bhqd,bhkd->bhqk", qh, kh) / math.sqrt(dh)
    probs = jax.nn.softmax(scores, axis=-1)
    ctx = jnp.einsum("bhqk,bhkd->bhqd", probs, vh)
    return ctx.transpose(0, 2, 1, 3).reshape(B, S, D)


# ----------------------------- main -------------------------------------------

if __name__ == "__main__":
    # config: dim=32, n_heads=4 -> head_dim=8 ; batch=2, seq=8
    B, S, D, H = 2, 8, 32, 4

    key = jax.random.PRNGKey(0)
    k0, k1, k2, k3, k4, k5, k6 = jax.random.split(key, 7)

    hidden_states = jax.random.normal(k0, (B, S, D), dtype=jnp.float32)

    # Deterministic parameter init (shapes follow nn.Linear(dim, dim)).
    init_scale = 1.0 / math.sqrt(D)
    params = {
        "wq": jax.random.uniform(k1, (D, D), jnp.float32, -init_scale, init_scale),
        "bq": jax.random.uniform(k2, (D,), jnp.float32, -init_scale, init_scale),
        "wk": jax.random.uniform(k3, (D, D), jnp.float32, -init_scale, init_scale),
        "bk": jax.random.uniform(k4, (D,), jnp.float32, -init_scale, init_scale),
        "wv": jax.random.uniform(k5, (D, D), jnp.float32, -init_scale, init_scale),
        "bv": jax.random.uniform(k6, (D,), jnp.float32, -init_scale, init_scale),
    }

    out = self_attention_forward(hidden_states, params, H)
    out = jax.block_until_ready(out)

    ref = _reference(hidden_states, params, H)
    assert out.shape == (B, S, D), out.shape
    max_err = float(jnp.max(jnp.abs(out - ref)))
    # Tolerance accounts for bf16 MXU operands (f32 accumulation / f32 softmax);
    # observed error at these sizes is ~1e-3.
    assert bool(jnp.isfinite(out).all()), "non-finite output"
    assert bool(jnp.allclose(out, ref, atol=3e-2, rtol=3e-2)), max_err

    print("KERNEL_OK")
</pallas_src>

<mosaic_0001>
module attributes {stable_mosaic.version = 11 : i64} {
  func.func @_qkv_proj_kernel(%arg0: i32, %arg1: memref<16x32xbf16, #tpu.memory_space<vmem>>, %arg2: memref<96x32xbf16, #tpu.memory_space<vmem>>, %arg3: memref<1x96xf32, #tpu.memory_space<vmem>>, %arg4: memref<16x96xbf16, #tpu.memory_space<vmem>>) attributes {dimension_semantics = [#tpu.dimension_semantics<parallel>], iteration_bounds = array<i64: 1>, scalar_prefetch = 0 : i64, scratch_operands = 0 : i64, tpu.core_type = #tpu.core_type<tc>, window_params = [{transform_indices = @transform_0, window_bounds = array<i64: 16, 32>}, {pipeline_mode = #tpu.pipeline_mode<synchronous>, transform_indices = @transform_1, window_bounds = array<i64: 96, 32>}, {pipeline_mode = #tpu.pipeline_mode<synchronous>, transform_indices = @transform_2, window_bounds = array<i64: 1, 96>}, {transform_indices = @transform_3, window_bounds = array<i64: 16, 96>}]} {
    %c0 = arith.constant 0 : index
    %c0_0 = arith.constant 0 : index
    %0 = vector.load %arg1[%c0, %c0_0] : memref<16x32xbf16, #tpu.memory_space<vmem>>, vector<16x32xbf16>
    %c0_1 = arith.constant 0 : index
    %c0_2 = arith.constant 0 : index
    %1 = vector.load %arg2[%c0_1, %c0_2] : memref<96x32xbf16, #tpu.memory_space<vmem>>, vector<96x32xbf16>
    %cst = arith.constant dense<0.000000e+00> : vector<16x96xf32>
    %2 = tpu.matmul %0, %1, %cst {dimension_numbers = #tpu.dot_dimension_numbers<[1], [1], [0], [0], [0, 0, 1, 0], [], []>} : vector<16x32xbf16>, vector<96x32xbf16>, vector<16x96xf32> -> vector<16x96xf32>
    %c0_3 = arith.constant 0 : index
    %c0_4 = arith.constant 0 : index
    %3 = vector.load %arg3[%c0_3, %c0_4] : memref<1x96xf32, #tpu.memory_space<vmem>>, vector<1x96xf32>
    %4 = vector.broadcast %3 : vector<1x96xf32> to vector<16x96xf32>
    %5 = arith.addf %2, %4 : vector<16x96xf32>
    %6 = arith.truncf %5 : vector<16x96xf32> to vector<16x96xbf16>
    %c0_5 = arith.constant 0 : index
    %c0_6 = arith.constant 0 : index
    %7 = vector.load %arg4[%c0_5, %c0_6] : memref<16x96xbf16, #tpu.memory_space<vmem>>, vector<16x96xbf16>
    tpu.vector_store %arg4[%c0_5, %c0_6], %6 {strides = array<i32>} : memref<16x96xbf16, #tpu.memory_space<vmem>>, vector<16x96xbf16>,
    return
  }
  func.func @transform_0(%arg0: i32) -> (i32, i32) {
    %c0_i32 = arith.constant 0 : i32
    %c0_i32_0 = arith.constant 0 : i32
    return %arg0, %c0_i32 : i32, i32
  }
  func.func @transform_1(%arg0: i32) -> (i32, i32) {
    %c0_i32 = arith.constant 0 : i32
    %c0_i32_0 = arith.constant 0 : i32
    %c0_i32_1 = arith.constant 0 : i32
    return %c0_i32, %c0_i32_0 : i32, i32
  }
  func.func @transform_2(%arg0: i32) -> (i32, i32) {
    %c0_i32 = arith.constant 0 : i32
    %c0_i32_0 = arith.constant 0 : i32
    %c0_i32_1 = arith.constant 0 : i32
    return %c0_i32, %c0_i32_0 : i32, i32
  }
  func.func @transform_3(%arg0: i32) -> (i32, i32) {
    %c0_i32 = arith.constant 0 : i32
    %c0_i32_0 = arith.constant 0 : i32
    return %arg0, %c0_i32 : i32, i32
  }
}

</mosaic_0001>

<bundles_post_ra>
// kernel: tpu_custom_call.1
= control target key start
LH: loop header
LB: loop body
LE: loop exit
PB: predicated region body
PF: predicated region fallthrough
CT: control target
= control target key end

     0   :  { %v234_v1 = vmov 0.0   ;;  %vm72_vm0 = vcmask 261120   ;;  %vm235_vm1 = vmmov 0   ;;  %s302_s0 = inlined_call_operand.vmem [shape: bf16[16,32], index: 0, kind: input, shape index: {}]   ;;  %s303_s1 = inlined_call_operand.vmem [shape: bf16[96,32], index: 1, kind: input, shape index: {}]   ;;  %s304_s2 = inlined_call_operand.vmem [shape: f32[1,96], index: 2, kind: input, shape index: {}]   ;;  %s305_s3 = inlined_call_operand.hbm [shape: bf16[16,96], index: 3, kind: output, shape index: {}]  }
   0x1   :  { %v203_v0 = vld [vmem:[%s303_s1] sm:$0xff]   ;;  %182 = vmatprep.subr.bf16.mxu0 %v234_v1  ;;  %v204_v3 = vld [vmem:[%s303_s1 + $0x8] sm:$0xff]   ;;  %194 = vmatprep.mubr.msk.bf16.mxu0 %vm235_vm1, %v234_v1 }
   0x2   :  { %v77_v2 = vsel %vm72_vm0, %v203_v0, 0 }
   0x3   :  { %183 = vmatpush3.bf16.xpose.msra.mxu0 %v77_v2 }
   0x4   :  { %184 = vmatprep.subr.bf16.mxu0 %v234_v1 }
   0x5   :  { %8 = vsyncpa [#allocation3], 0  ;;  %v80_v4 = vsel %vm72_vm0, %v204_v3, 0  ;;  %v205_v5 = vld [vmem:[%s303_s1 + $0x10] sm:$0xff]   ;;  %v206_v7 = vld [vmem:[%s303_s1 + $0x18] sm:$0xff]   ;;  %s236_s28 = smov [#allocation2]  }
   0x6   :  { %v83_v6 = vsel %vm72_vm0, %v205_v5, 0  ;;  %v86_v8 = vsel %vm72_vm0, %v206_v7, 0  ;;  %v207_v9 = vld [vmem:[%s303_s1 + $0x20] sm:$0xff]   ;;  %v208_v11 = vld [vmem:[%s303_s1 + $0x28] sm:$0xff]   ;;  %s151_s29 = sshll.u32 %s236_s28, 4  ;;  %vm143_vm2 = vcmask 781312   ;;  %s152_s29 = int_to_ptr.vmem [resolvable:$true] %s151_s29 }
   0x7   :  { %v89_v10 = vsel %vm72_vm0, %v207_v9, 0  ;;  %v92_v12 = vsel %vm72_vm0, %v208_v11, 0  ;;  %v209_v13 = vld [vmem:[%s302_s0] sm:$0xff]   ;;  %s210_s0 = scalar_lea.vmem %s152_s29, 128  ;;  %p215_p1 = scmp.lt.s32.totalorder %s152_s29, %s152_s29 }
   0x8   :  { %v162_v14 = vld [vmem:[%s304_s2] ss:$0 sm:$0xff]  ;;  %p211_p0 = scmp.ne.s32.totalorder %s152_s29, %s210_s0  ;;  %p216_p2 = scmp.lt.s32.totalorder %s210_s0, %s210_s0 }
   0xa   :  { %p217_p3 = por %p216_p2, %p215_p1 }
   0xb   :  { %185 = vmatpush3.bf16.xpose.msra.mxu0 %v80_v4 }
   0xc   :  { %186 = vmatprep.subr.bf16.mxu0 %v234_v1  ;;  %p218_p4 = pnand %p217_p3, %p211_p0 }
  0x13   :  { %187 = vmatpush3.bf16.xpose.msra.mxu0 %v83_v6 }
  0x14   :  { %188 = vmatprep.subr.bf16.mxu0 %v234_v1 }
  0x1b   :  { %189 = vmatpush3.bf16.xpose.msra.mxu0 %v86_v8 }
  0x1c   :  { %190 = vmatprep.subr.bf16.mxu0 %v234_v1 }
  0x23   :  { %191 = vmatpush3.bf16.xpose.msra.mxu0 %v89_v10 }
  0x24   :  { %192 = vmatprep.subr.bf16.mxu0 %v234_v1 }
  0x2b   :  { %193 = vmatpush3.bf16.xpose.msra.mxu0 %v92_v12 }
  0x32   :  { %195 = vmatmul.mubr.msk.bf16.vlgmr.msra.gmra.mrb[0].mxu0 %vm72_vm0, %v209_v13 }
 0x105   :  { %v128_v15 = vpop.f32.mrb[0].mxu0 }
 0x106   :  { %v129_v16 = vadd.f32 %v162_v14, %v128_v15  ;;  %v196_v17 = vpop.f32.mrb[1].mxu0 }
 0x107   :  { %v131_v18 = vpop.f32.mrb[2].mxu0 }
 0x108   :  { %v173_v19 = vpack.c.bf16 %v129_v16, %v129_v16  ;;  %v132_v20 = vadd.f32 %v162_v14, %v131_v18  ;;  %v197_v21 = vpop.f32.mrb[3].mxu0 }
 0x10a   :  { %144 = vst.msk [vmem:[#allocation2] sm:$0xf] %vm143_vm2, %v173_v19  ;;  %v174_v22 = vpack.c.bf16 %v132_v20, %v132_v20 }
 0x10c   :  { %145 = vst.msk [vmem:[#allocation2 + $0x4] sm:$0xf] %vm143_vm2, %v174_v22 }
 0x10d   :  { %221 = shalt.err (!%p218_p4)
}
 0x10e   :  { %s222_s30 = scalar_lea.hbm %s305_s3, 128 }
 0x10f   :  { %p223_p5 = scmp.ne.s32.totalorder %s305_s3, %s222_s30  ;;  %p226_p6 = scmp.lt.u32.totalorder %s222_s30, %s305_s3 }
 0x111   :  { %p228_p7 = pnand %p226_p6, %p223_p5 }
 0x113   :  { %231 = shalt.err (!%p228_p7)
}
 0x114   :  { %s237_s8 = smov 64   ;;  %s238_s9 = smov 4  }
 0x115   :  { %157 = dma.vmem_to_hbm [thread:$0]  %s152_s29, 128, %s305_s3, [#allocation3], %s237_s8, %s237_s8, %s238_s9  }
 0x116   :  { %232 = dma.done.wait [#allocation3], 128  }
 0x117   :  { %233 = vsyncadd [#allocation3], 4294967168 }
 0x118   :  { %161 = vsyncpa [#allocation3], 1 }

</bundles_post_ra>
